<compile_context>
chip_gen: v6e
topology: v6e:2x2x1
jax: 0.10.0
libtpu: 0.0.40
codegen_flags: <defaults>
</compile_context>

<pallas_src>
import functools

import jax
import jax.numpy as jnp
from jax.experimental import pallas as pl
from jax.experimental.pallas import tpu as pltpu

BN_EPS = 1e-5      # nn.BatchNorm1d default eps
NORM_EPS = 1e-12   # F.normalize default eps


# ----------------------------- kernel --------------------------------------- #

def _fused_head_kernel(num_blocks, *refs):
    """refs layout:
         x             (B, d_in)         f32  -- resident (constant index_map)
         [w_t, bias] * num_blocks        f32  -- resident, BN folded, (in,out)/(1,out)
         w_head tile   (d_final, TN)     bf16 -- streamed over the speaker axis
         out tile      (B, TN)           f32

    Recomputes the dense stack + row L2 normalization per tile (cheap), then one
    MXU matmul per speaker tile: logits = normalize(x) @ normalize(W).T
    """
    x_ref = refs[0]
    w_head_ref = refs[1 + 2 * num_blocks]
    out_ref = refs[2 + 2 * num_blocks]

    x = x_ref[...].astype(jnp.float32)
    idx = 1
    for _ in range(num_blocks):
        w_ref, b_ref = refs[idx], refs[idx + 1]
        idx += 2
        # BatchNorm already folded into w/b on the host; single MXU matmul + bias.
        x = jnp.dot(x, w_ref[...], preferred_element_type=jnp.float32) + b_ref[...]

    # F.normalize: x / max(||x||, eps)  ==  x * rsqrt(max(sum(x*x), eps^2))  (EUP)
    sumsq = jnp.sum(x * x, axis=-1, keepdims=True)
    x_n = x * jax.lax.rsqrt(jnp.maximum(sumsq, NORM_EPS * NORM_EPS))

    out_ref[...] = jnp.dot(x_n.astype(jnp.bfloat16), w_head_ref[...],
                           preferred_element_type=jnp.float32)


# ----------------------------- host-side prep (run once, cache) ------------- #

def prepare_speaker_id_params(block_params, cls_weight, *, tile_n=512):
    """All x-independent work. Call once and reuse the result per forward call.

    - Folds inference-mode BatchNorm1d into each dense weight/bias and
      pre-transposes the weight to (in, out) so the kernel feeds the MXU directly.
    - L2-normalizes the AAMLoss classifier weight, transposes to (d_final, n),
      zero-pads the speaker axis to a tile multiple, stores it in bf16.
    """
    # TODO(synk): BatchNorm1d is folded in inference mode (running stats only);
    # training-mode batch statistics are not modeled.
    dense_ws, dense_bs = [], []
    for p in block_params:
        w = p["w"].astype(jnp.float32)                               # (out, in)
        scale = p["gamma"].astype(jnp.float32) * jax.lax.rsqrt(
            p["var"].astype(jnp.float32) + BN_EPS)                   # (out,)
        dense_ws.append((w * scale[:, None]).T)                      # (in, out)
        dense_bs.append((p["beta"].astype(jnp.float32)
                         - p["mean"].astype(jnp.float32) * scale).reshape(1, -1))

    w32 = cls_weight.astype(jnp.float32)                             # (n_out, d_final)
    w_sumsq = jnp.sum(w32 * w32, axis=-1, keepdims=True)
    w_n = w32 * jax.lax.rsqrt(jnp.maximum(w_sumsq, NORM_EPS * NORM_EPS))
    n_out, d_final = w_n.shape

    # Lane-dense tile width: multiple of 128, no wider than the speaker count needs.
    tile_n = max(128, (tile_n // 128) * 128)
    n_min = pl.cdiv(n_out, 128) * 128
    tile_n = min(tile_n, n_min)
    n_pad = pl.cdiv(n_out, tile_n) * tile_n

    w_head = jnp.zeros((d_final, n_pad), jnp.bfloat16)
    w_head = w_head.at[:, :n_out].set(w_n.T.astype(jnp.bfloat16))

    return dict(dense_ws=dense_ws, dense_bs=dense_bs, w_head=w_head,
                n_out=n_out, d_final=d_final, tile_n=tile_n, n_pad=n_pad)


# ----------------------------- forward -------------------------------------- #

def speaker_identification_forward(features, prepared):
    """features: (B, input_dim); prepared: output of prepare_speaker_id_params.
       Returns {'features': features, 'logits': (B, num_speakers * K)}."""
    num_blocks = len(prepared["dense_ws"])
    batch, d_in = features.shape
    d_final = prepared["d_final"]
    tile_n = prepared["tile_n"]
    n_pad = prepared["n_pad"]
    n_out = prepared["n_out"]

    x32 = features.astype(jnp.float32)

    def resident(shape):
        return pl.BlockSpec(shape, lambda j: (0, 0))

    in_specs = [resident((batch, d_in))]
    inputs = [x32]
    for w_t, b in zip(prepared["dense_ws"], prepared["dense_bs"]):
        in_specs += [resident(w_t.shape), resident(b.shape)]
        inputs += [w_t, b]
    in_specs.append(pl.BlockSpec((d_final, tile_n), lambda j: (0, j)))
    inputs.append(prepared["w_head"])

    grid = (n_pad // tile_n,)
    logits_pad = pl.pallas_call(
        functools.partial(_fused_head_kernel, num_blocks),
        out_shape=jax.ShapeDtypeStruct((batch, n_pad), jnp.float32),
        grid=grid,
        in_specs=in_specs,
        out_specs=pl.BlockSpec((batch, tile_n), lambda j: (0, j)),
        compiler_params=pltpu.CompilerParams(
            dimension_semantics=("parallel",)),
        cost_estimate=pl.CostEstimate(
            flops=2 * batch * d_final * n_pad,
            transcendentals=batch * grid[0],
            bytes_accessed=(4 * batch * d_in
                            + 2 * d_final * n_pad        # bf16 weight stream
                            + 4 * batch * n_pad)),
    )(*inputs)

    # Avoid the padding slice when the speaker axis is already tile-aligned.
    logits = logits_pad if n_pad == n_out else logits_pad[:, :n_out]
    # TODO(synk): SubCenterLoss (K>1) applies a per-speaker max over K sub-center
    # logits downstream; this module only emits the raw (B, num_speakers*K) logits.
    return {"features": features, "logits": logits}


# ----------------------------- reference ------------------------------------ #

def _reference(features, block_params, cls_weight):
    x = features.astype(jnp.float32)
    for p in block_params:
        x = jnp.dot(x, p["w"].T, precision=jax.lax.Precision.HIGHEST)
        x = (x - p["mean"]) / jnp.sqrt(p["var"] + BN_EPS) * p["gamma"] + p["beta"]
    xn = x / jnp.maximum(jnp.linalg.norm(x, axis=-1, keepdims=True), NORM_EPS)
    wn = cls_weight / jnp.maximum(
        jnp.linalg.norm(cls_weight, axis=-1, keepdims=True), NORM_EPS)
    return jnp.dot(xn, wn.T, precision=jax.lax.Precision.HIGHEST)


if __name__ == "__main__":
    batch, input_dim, inter_dim = 8, 64, 128
    num_speakers, K, num_blocks = 32, 1, 1  # loss_type='AAMLoss'

    key = jax.random.PRNGKey(0)
    keys = jax.random.split(key, 2 + 5 * num_blocks)

    features = jax.random.normal(keys[0], (batch, input_dim), jnp.float32)

    # Deterministic synthetic parameters (shapes from the module's __init__).
    block_params = []
    d_in = input_dim
    ki = 1
    for _ in range(num_blocks):
        w = jax.random.normal(keys[ki], (inter_dim, d_in), jnp.float32) / jnp.sqrt(float(d_in)); ki += 1
        gamma = 1.0 + 0.1 * jax.random.normal(keys[ki], (inter_dim,), jnp.float32); ki += 1
        beta = 0.1 * jax.random.normal(keys[ki], (inter_dim,), jnp.float32); ki += 1
        mean = 0.1 * jax.random.normal(keys[ki], (inter_dim,), jnp.float32); ki += 1
        var = jnp.abs(1.0 + 0.1 * jax.random.normal(keys[ki], (inter_dim,), jnp.float32)); ki += 1
        block_params.append(dict(w=w, gamma=gamma, beta=beta, mean=mean, var=var))
        d_in = inter_dim

    # xavier_uniform_ for the AAMLoss classifier weight (num_speakers * K, d_in)
    bound = float(jnp.sqrt(6.0 / (num_speakers * K + d_in)))
    cls_weight = jax.random.uniform(keys[-1], (num_speakers * K, d_in),
                                    jnp.float32, -bound, bound)

    # One-time (cacheable) host-side parameter preparation.
    prepared = prepare_speaker_id_params(block_params, cls_weight, tile_n=512)
    prepared = jax.tree_util.tree_map(
        lambda a: jax.block_until_ready(a) if isinstance(a, jax.Array) else a,
        prepared)

    out = speaker_identification_forward(features, prepared)
    logits = jax.block_until_ready(out["logits"])

    ref = _reference(features, block_params, cls_weight)
    assert logits.shape == (batch, num_speakers * K)
    # MXU runs at DEFAULT precision with bf16 classifier weights; logits are
    # cosine similarities in [-1, 1], so a 2e-2 absolute tolerance is ample.
    assert jnp.allclose(logits, ref, atol=2e-2, rtol=2e-2), "mismatch vs reference"
    assert jnp.allclose(out["features"], features)

    print("KERNEL_OK")
</pallas_src>

<mosaic_0001>
module attributes {stable_mosaic.version = 11 : i64} {
  func.func @_fused_head_kernel(%arg0: i32, %arg1: memref<8x64xf32, #tpu.memory_space<vmem>>, %arg2: memref<64x128xf32, #tpu.memory_space<vmem>>, %arg3: memref<1x128xf32, #tpu.memory_space<vmem>>, %arg4: memref<128x128xbf16, #tpu.memory_space<vmem>>, %arg5: memref<8x128xf32, #tpu.memory_space<vmem>>) attributes {dimension_semantics = [#tpu.dimension_semantics<parallel>], iteration_bounds = array<i64: 1>, scalar_prefetch = 0 : i64, scratch_operands = 0 : i64, tpu.core_type = #tpu.core_type<tc>, window_params = [{pipeline_mode = #tpu.pipeline_mode<synchronous>, transform_indices = @transform_0, window_bounds = array<i64: 8, 64>}, {pipeline_mode = #tpu.pipeline_mode<synchronous>, transform_indices = @transform_1, window_bounds = array<i64: 64, 128>}, {pipeline_mode = #tpu.pipeline_mode<synchronous>, transform_indices = @transform_2, window_bounds = array<i64: 1, 128>}, {transform_indices = @transform_3, window_bounds = array<i64: 128, 128>}, {transform_indices = @transform_4, window_bounds = array<i64: 8, 128>}]} {
    %c0 = arith.constant 0 : index
    %c0_0 = arith.constant 0 : index
    %0 = vector.load %arg1[%c0, %c0_0] : memref<8x64xf32, #tpu.memory_space<vmem>>, vector<8x64xf32>
    %c0_1 = arith.constant 0 : index
    %c0_2 = arith.constant 0 : index
    %1 = vector.load %arg2[%c0_1, %c0_2] : memref<64x128xf32, #tpu.memory_space<vmem>>, vector<64x128xf32>
    %cst = arith.constant dense<0.000000e+00> : vector<8x128xf32>
    %2 = tpu.matmul %0, %1, %cst {dimension_numbers = #tpu.dot_dimension_numbers<[1], [0], [0], [1], [0, 0, 1, 1], [], []>} : vector<8x64xf32>, vector<64x128xf32>, vector<8x128xf32> -> vector<8x128xf32>
    %c0_3 = arith.constant 0 : index
    %c0_4 = arith.constant 0 : index
    %3 = vector.load %arg3[%c0_3, %c0_4] : memref<1x128xf32, #tpu.memory_space<vmem>>, vector<1x128xf32>
    %4 = vector.broadcast %3 : vector<1x128xf32> to vector<8x128xf32>
    %5 = arith.addf %2, %4 : vector<8x128xf32>
    %6 = arith.mulf %5, %5 : vector<8x128xf32>
    %cst_5 = arith.constant dense<0.000000e+00> : vector<8xf32>
    %7 = vector.multi_reduction <add>, %6, %cst_5 [1] : vector<8x128xf32> to vector<8xf32>
    %8 = vector.shape_cast %7 : vector<8xf32> to vector<8x1xf32>
    %cst_6 = arith.constant 1.000000e-24 : f32
    %9 = vector.broadcast %cst_6 : f32 to vector<8x1xf32>
    %10 = arith.maximumf %8, %9 : vector<8x1xf32>
    %11 = math.rsqrt %10 : vector<8x1xf32>
    %12 = vector.broadcast %11 : vector<8x1xf32> to vector<8x128xf32>
    %13 = arith.mulf %5, %12 : vector<8x128xf32>
    %14 = arith.truncf %13 : vector<8x128xf32> to vector<8x128xbf16>
    %c0_7 = arith.constant 0 : index
    %c0_8 = arith.constant 0 : index
    %15 = vector.load %arg4[%c0_7, %c0_8] : memref<128x128xbf16, #tpu.memory_space<vmem>>, vector<128x128xbf16>
    %cst_9 = arith.constant dense<0.000000e+00> : vector<8x128xf32>
    %16 = tpu.matmul %14, %15, %cst_9 {dimension_numbers = #tpu.dot_dimension_numbers<[1], [0], [0], [1], [0, 0, 1, 1], [], []>} : vector<8x128xbf16>, vector<128x128xbf16>, vector<8x128xf32> -> vector<8x128xf32>
    %c0_10 = arith.constant 0 : index
    %c0_11 = arith.constant 0 : index
    %17 = vector.load %arg5[%c0_10, %c0_11] : memref<8x128xf32, #tpu.memory_space<vmem>>, vector<8x128xf32>
    tpu.vector_store %arg5[%c0_10, %c0_11], %16 {strides = array<i32>} : memref<8x128xf32, #tpu.memory_space<vmem>>, vector<8x128xf32>,
    return
  }
  func.func @transform_0(%arg0: i32) -> (i32, i32) {
    %c0_i32 = arith.constant 0 : i32
    %c0_i32_0 = arith.constant 0 : i32
    %c0_i32_1 = arith.constant 0 : i32
    return %c0_i32, %c0_i32_0 : i32, i32
  }
  func.func @transform_1(%arg0: i32) -> (i32, i32) {
    %c0_i32 = arith.constant 0 : i32
    %c0_i32_0 = arith.constant 0 : i32
    %c0_i32_1 = arith.constant 0 : i32
    return %c0_i32, %c0_i32_0 : i32, i32
  }
  func.func @transform_2(%arg0: i32) -> (i32, i32) {
    %c0_i32 = arith.constant 0 : i32
    %c0_i32_0 = arith.constant 0 : i32
    %c0_i32_1 = arith.constant 0 : i32
    return %c0_i32, %c0_i32_0 : i32, i32
  }
  func.func @transform_3(%arg0: i32) -> (i32, i32) {
    %c0_i32 = arith.constant 0 : i32
    %c0_i32_0 = arith.constant 0 : i32
    return %c0_i32, %arg0 : i32, i32
  }
  func.func @transform_4(%arg0: i32) -> (i32, i32) {
    %c0_i32 = arith.constant 0 : i32
    %c0_i32_0 = arith.constant 0 : i32
    return %c0_i32, %arg0 : i32, i32
  }
}

</mosaic_0001>

<bundles_post_ra>
// kernel: tpu_custom_call.1
= control target key start
LH: loop header
LB: loop body
LE: loop exit
PB: predicated region body
PF: predicated region fallthrough
CT: control target
= control target key end

     0   :  { %9 = vsyncpa [#allocation3], 0  ;;  %s499_s0 = inlined_call_operand.hbm [shape: f32[8,64], index: 0, kind: input, shape index: {}]   ;;  %s500_s1 = inlined_call_operand.hbm [shape: f32[64,128], index: 1, kind: input, shape index: {}]   ;;  %s501_s2 = inlined_call_operand.vmem [shape: f32[1,128], index: 2, kind: input, shape index: {}]   ;;  %s502_s3 = inlined_call_operand.hbm [shape: bf16[128,128], index: 3, kind: input, shape index: {}]   ;;  %s503_s4 = inlined_call_operand.hbm [shape: f32[8,128], index: 4, kind: output, shape index: {}]  }
   0x1   :  { %10 = vsyncpa [#allocation6], 0 }
   0x2   :  { %11 = vsyncpa [#allocation4], 0  ;;  %s449_s15 = smov [#allocation5]  }
   0x3   :  { %s27_s16 = sshll.u32 %s449_s15, 4  ;;  %s28_s16 = int_to_ptr.vmem [resolvable:$true] %s27_s16 }
   0x4   :  { %s371_s17 = scalar_lea.vmem %s28_s16, 1024  ;;  %p376_p1 = scmp.lt.s32.totalorder %s28_s16, %s28_s16 }
   0x5   :  { %p372_p0 = scmp.ne.s32.totalorder %s28_s16, %s371_s17  ;;  %p377_p2 = scmp.lt.s32.totalorder %s371_s17, %s371_s17 }
   0x7   :  { %p378_p3 = por %p377_p2, %p376_p1 }
   0x9   :  { %p379_p4 = pnand %p378_p3, %p372_p0 }
   0xb   :  { %382 = shalt.err (!%p379_p4)
}
   0xc   :  { %s450_s18 = smov 128   ;;  %s451_s19 = smov 8  }
   0xd   :  { %33 = dma.hbm_to_vmem [thread:$0]  %s500_s1, 1024, %s28_s16, [#allocation6], %s450_s18, %s450_s18, %s451_s19  }
   0xe   :  { %s452_s22 = smov [#allocation2]   ;;  %s453_s24 = smov [#allocation7]  }
   0xf   :  { %s18_s23 = sshll.u32 %s452_s22, 4  ;;  %s41_s25 = sshll.u32 %s453_s24, 4  ;;  %s19_s23 = int_to_ptr.vmem [resolvable:$true] %s18_s23  ;;  %s42_s25 = int_to_ptr.vmem [resolvable:$true] %s41_s25 }
  0x10   :  { %s391_s26 = scalar_lea.vmem %s19_s23, 128  ;;  %p396_p6 = scmp.lt.s32.totalorder %s19_s23, %s19_s23 }
  0x11   :  { %p392_p5 = scmp.ne.s32.totalorder %s19_s23, %s391_s26  ;;  %p397_p7 = scmp.lt.s32.totalorder %s391_s26, %s391_s26 }
  0x13   :  { %p398_p8 = por %p397_p7, %p396_p6 }
  0x15   :  { %p399_p9 = pnand %p398_p8, %p392_p5 }
  0x17   :  { %402 = shalt.err (!%p399_p9)
}
  0x18   :  { %21 = dma.hbm_to_vmem [thread:$0]  %s499_s0, 128, %s19_s23, [#allocation3]  }
  0x19   :  { %s411_s29 = scalar_lea.vmem %s42_s25, 1024  ;;  %p416_p11 = scmp.lt.s32.totalorder %s42_s25, %s42_s25 }
  0x1a   :  { %p412_p10 = scmp.ne.s32.totalorder %s42_s25, %s411_s29  ;;  %p417_p12 = scmp.lt.s32.totalorder %s411_s29, %s411_s29 }
  0x1c   :  { %p418_p13 = por %p417_p12, %p416_p11 }
  0x1e   :  { %p419_p0 = pnand %p418_p13, %p412_p10 }
  0x20   :  { %422 = shalt.err (!%p419_p0)
}
  0x21   :  { %s454_s1 = smov 64   ;;  %s455_s30 = smov 4  }
  0x22   :  { %47 = dma.hbm_to_vmem [thread:$0]  %s502_s3, 1024, %s42_s25, [#allocation6], %s454_s1, %s454_s1, %s455_s30  }
  0x23   :  { %443 = dma.done.wait [#allocation3], 128  }
  0x24   :  { %444 = vsyncadd [#allocation3], 4294967168 }
  0x25   :  { %445 = dma.done.wait [#allocation6], 2048  }
  0x26   :  { %446 = vsyncadd [#allocation6], 4294965248  ;;  %v456_v0 = vmov 0.0   ;;  %vm457_vm0 = vmmov 0   ;;  %v66_v1 = vld [vmem:[#allocation5 + $0x38] sm:$0xff]  ;;  %v65_v2 = vld [vmem:[#allocation5 + $0x30] sm:$0xff] }
  0x27   :  { %304 = vmatprep.subr.mxu0 %v456_v0  ;;  %320 = vmatprep.mubr.msk.f32.mxu0 %vm457_vm0, %v456_v0  ;;  %v64_v3 = vld [vmem:[#allocation5 + $0x28] sm:$0xff]  ;;  %v63_v4 = vld [vmem:[#allocation5 + $0x20] sm:$0xff]  ;;  %v62_v5 = vld [vmem:[#allocation5 + $0x18] sm:$0xff]  ;;  %vm74_vm1 = vcmask 523264  }
  0x28   :  { %323 = vmatprep.subr.bf16.mxu1 %v456_v0  ;;  %339 = vmatprep.mubr.msk.bf16.mxu1 %vm457_vm0, %v456_v0  ;;  %v61_v6 = vld [vmem:[#allocation5 + $0x10] sm:$0xff]  ;;  %v60_v7 = vld [vmem:[#allocation5 + $0x8] sm:$0xff]  ;;  %v59_v8 = vld [vmem:[#allocation5] sm:$0xff] }
  0x29   :  { %305 = vmatpush3.msra.mxu0 %v66_v1  ;;  %v58_v9 = vld [vmem:[#allocation2] sm:$0xff]  ;;  %v354_v11 = vld [vmem:[#allocation7 + $0x30] sm:$0xff]   ;;  %v355_v12 = vld [vmem:[#allocation7 + $0x28] sm:$0xff]  }
  0x2a   :  { %306 = vmatprep.subr.mxu0 %v456_v0  ;;  %v353_v10 = vld [vmem:[#allocation7 + $0x38] sm:$0xff]   ;;  %v356_v18 = vld [vmem:[#allocation7 + $0x20] sm:$0xff]   ;;  %v358_v20 = vld [vmem:[#allocation7 + $0x10] sm:$0xff]  }
  0x2b   :  { %307 = vmatpush3.msra.mxu0 %v65_v2  ;;  %324 = vmatpush3.bf16.msra.mxu1 %v353_v10  ;;  %v276_v13 = vld [vmem:[%s501_s2] ss:$0 sm:$0xff]  ;;  %v359_v21 = vld [vmem:[#allocation7 + $0x8] sm:$0xff]   ;;  %v360_v22 = vld [vmem:[#allocation7] sm:$0xff]   ;;  %s458_s2 = smov [#allocation8]  }
  0x2c   :  { %308 = vmatprep.subr.mxu0 %v456_v0  ;;  %325 = vmatprep.subr.bf16.mxu1 %v456_v0  ;;  %v357_v19 = vld [vmem:[#allocation7 + $0x18] sm:$0xff]   ;;  %s266_s7 = sshll.u32 %s458_s2, 4  ;;  %s267_s7 = int_to_ptr.vmem [resolvable:$true] %s266_s7 }
  0x2d   :  { %309 = vmatpush3.msra.mxu0 %v64_v3  ;;  %s423_s8 = scalar_lea.vmem %s267_s7, 128  ;;  %p428_p2 = scmp.lt.s32.totalorder %s267_s7, %s267_s7 }
  0x2e   :  { %310 = vmatprep.subr.mxu0 %v456_v0  ;;  %p424_p1 = scmp.ne.s32.totalorder %s267_s7, %s423_s8  ;;  %p429_p3 = scmp.lt.s32.totalorder %s423_s8, %s423_s8 }
  0x2f   :  { %311 = vmatpush3.msra.mxu0 %v63_v4  ;;  %326 = vmatpush3.bf16.msra.mxu1 %v354_v11 }
  0x30   :  { %312 = vmatprep.subr.mxu0 %v456_v0  ;;  %327 = vmatprep.subr.bf16.mxu1 %v456_v0  ;;  %p430_p4 = por %p429_p3, %p428_p2 }
  0x31   :  { %313 = vmatpush3.msra.mxu0 %v62_v5 }
  0x32   :  { %314 = vmatprep.subr.mxu0 %v456_v0  ;;  %p431_p5 = pnand %p430_p4, %p424_p1 }
  0x33   :  { %315 = vmatpush3.msra.mxu0 %v61_v6  ;;  %328 = vmatpush3.bf16.msra.mxu1 %v355_v12 }
  0x34   :  { %316 = vmatprep.subr.mxu0 %v456_v0  ;;  %329 = vmatprep.subr.bf16.mxu1 %v456_v0 }
  0x35   :  { %317 = vmatpush3.msra.mxu0 %v60_v7 }
  0x36   :  { %318 = vmatprep.subr.mxu0 %v456_v0 }
  0x37   :  { %319 = vmatpush3.msra.mxu0 %v59_v8  ;;  %330 = vmatpush3.bf16.msra.mxu1 %v356_v18 }
  0x38   :  { %321 = vmatmul.mubr.msk.f32.vlgmr.msra.gmra.mxu0 %vm74_vm1, %v58_v9  ;;  %331 = vmatprep.subr.bf16.mxu1 %v456_v0 }
  0x3b   :  { %332 = vmatpush3.bf16.msra.mxu1 %v357_v19 }
  0x3c   :  { %333 = vmatprep.subr.bf16.mxu1 %v456_v0 }
  0x3f   :  { %334 = vmatpush3.bf16.msra.mxu1 %v358_v20 }
  0x40   :  { %335 = vmatprep.subr.bf16.mxu1 %v456_v0 }
  0x43   :  { %336 = vmatpush3.bf16.msra.mxu1 %v359_v21 }
  0x44   :  { %337 = vmatprep.subr.bf16.mxu1 %v456_v0 }
  0x47   :  { %338 = vmatpush3.bf16.msra.mxu1 %v360_v22 }
  0xf8   :  { %v144_v14 = vpop.f32.mrf.mxu0 }
  0xf9   :  { %v145_v15 = vadd.f32 %v276_v13, %v144_v14 }
  0xfa   :  { %v322_v16 = vpop.f32.mrf.mxu0 }
  0xfb   :  { %v148_v17 = vmul.f32 %v145_v15, %v145_v15 }
  0xfd   :  { %149 = vadd.xlane.f32.xlu0 %v148_v17 }
 0x186   :  { %v150_v23 = vpop.xlane.xlu0 %149 }
 0x187   :  { %v151_v24 = vmax.f32 %v150_v23, 1e-24 }
 0x189   :  { %361 = vrsqrt.f32 %v151_v24 }
 0x196   :  { %v362_v25 = vpop.eup %361 }
 0x197   :  { %v153_v26 = vmul.f32 %v362_v25, %v145_v15 }
 0x199   :  { %v154_v27 = vpack.c.bf16 %v153_v26, %v153_v26 }
 0x19b   :  { %340 = vmatmul.mubr.bf16.vlgmr.msra.gmra.mxu1 %v154_v27 }
 0x25b   :  { %v253_v28 = vpop.f32.mrf.mxu1 }
 0x25c   :  { %259 = vst [vmem:[#allocation8] sm:$0xff] %v253_v28 }
 0x25d   :  { %v341_v29 = vpop.f32.mrf.mxu1 }
 0x25e   :  { %434 = shalt.err (!%p431_p5)
}
 0x25f   :  { %269 = dma.vmem_to_hbm [thread:$0]  %s267_s7, 128, %s503_s4, [#allocation4]   ;;  %v256_v30 = vpop.f32.mrf.mxu1 }
 0x261   :  { %v342_v31 = vpop.f32.mrf.mxu1 }
 0x262   :  { %447 = dma.done.wait [#allocation4], 128  }
 0x263   :  { %448 = vsyncadd [#allocation4], 4294967168 }
 0x264   :  { %273 = vsyncpa [#allocation3], 1 }
 0x265   :  { %274 = vsyncpa [#allocation6], 1 }
 0x266   :  { %275 = vsyncpa [#allocation4], 1 }

</bundles_post_ra>
